<compile_context>
chip_gen: v7x
topology: tpu7x:2x2x1
jax: 0.10.0
libtpu: 0.0.40
codegen_flags: <defaults>
</compile_context>

<pallas_src>
import math

import jax
import jax.numpy as jnp
from jax.experimental import pallas as pl
from jax.experimental.pallas import tpu as pltpu


def _round_up(x, m):
    return ((x + m - 1) // m) * m


def cauchy_linear_kernel(loc_ref, scale_ref, w_ref, b_ref, out_ref,
                         acc_loc_ref, acc_scale_ref):
    k = pl.program_id(2)

    @pl.when(k == 0)
    def _():
        acc_loc_ref[...] = jnp.zeros_like(acc_loc_ref)
        acc_scale_ref[...] = jnp.zeros_like(acc_scale_ref)

    # Single weight tile (pre-transposed to [tk, tn] in the wrapper) shared by
    # both accumulators; abs(W) is a cheap VPU op, no duplicated HBM traffic.
    w = w_ref[...]                                              # [tk, tn]
    acc_loc_ref[...] += jnp.dot(
        loc_ref[...], w, preferred_element_type=jnp.float32)
    acc_scale_ref[...] += jnp.dot(
        scale_ref[...], jnp.abs(w), preferred_element_type=jnp.float32)

    @pl.when(k == pl.num_programs(2) - 1)
    def _():
        # Packed, lane-dense epilogue: bias added once, outside the K loop.
        out_ref[0, :, :] = (acc_loc_ref[...] + b_ref[...]).astype(out_ref.dtype)
        out_ref[1, :, :] = acc_scale_ref[...].astype(out_ref.dtype)


def _pick_tiles(B, K, N):
    """Pick (tm, tn, tk) and padded dims, respecting (8, 128) tiling rules."""
    # --- M (sublane multiple of 8) ---
    tm = min(256, _round_up(B, 8))
    M_pad = _round_up(B, tm)

    # --- N (lane multiple of 128) ---
    N_pad = _round_up(N, 128)
    tn = next(c for c in (512, 256, 128) if N_pad % c == 0)
    # v7x has 2 TensorCores: keep >= 2 parallel (i, j) output blocks if we can.
    if M_pad // tm == 1 and N_pad // tn == 1 and N_pad >= 256:
        tn = next(c for c in (256, 128) if N_pad % c == 0 and N_pad // c >= 2)

    # --- K (reduction) ---
    if K <= 1024:
        # Block dim == full array dim is allowed: no padding, single K step.
        tk, K_pad = K, K
    else:
        K_pad = _round_up(K, 128)
        tk = next(c for c in (1024, 512, 256, 128) if K_pad % c == 0)

    return tm, tn, tk, M_pad, N_pad, K_pad


def _vmem_limit_bytes():
    """Generation-aware VMEM cap: ~3/4 of physical, at most 96 MiB, >= 32 MiB."""
    try:
        cap = pltpu.get_tpu_info().vmem_capacity_bytes
    except Exception:
        cap = 64 * 1024 * 1024  # v7x-safe fallback
    limit = min((cap * 3) // 4, 96 * 1024 * 1024)
    return max(limit, 32 * 1024 * 1024)


def cauchy_linear(loc, scale, weight, bias=None):
    """loc, scale: [B, in]; weight: [out, in]; bias: [out] or None
    -> (transformed_loc [B, out], transformed_scale [B, out])."""
    B, K = loc.shape
    N, Kw = weight.shape
    assert Kw == K and scale.shape == loc.shape
    dtype = loc.dtype

    tm, tn, tk, M_pad, N_pad, K_pad = _pick_tiles(B, K, N)
    grid = (M_pad // tm, N_pad // tn, K_pad // tk)

    # ---- zero-pad only when needed (zeros are neutral since |0| = 0) ----
    def pad2(x, rows, cols):
        r, c = x.shape
        if (r, c) == (rows, cols):
            return x
        return jnp.pad(x, ((0, rows - r), (0, cols - c)))

    loc_p = pad2(loc, M_pad, K_pad)
    scale_p = pad2(scale, M_pad, K_pad)
    # Pre-transpose weight once in the wrapper -> canonical [K, N] contraction
    # on the MXU (no per-step in-kernel transpose of the same W tile).
    w_t = pad2(weight.T, K_pad, N_pad)

    b = bias if bias is not None else jnp.zeros((N,), jnp.float32)
    b_p = b.astype(jnp.float32)
    if N_pad != N:
        b_p = jnp.pad(b_p, (0, N_pad - N))
    b_p = b_p.reshape(1, N_pad)

    out = pl.pallas_call(
        cauchy_linear_kernel,
        out_shape=jax.ShapeDtypeStruct((2, M_pad, N_pad), dtype),
        grid_spec=pltpu.PrefetchScalarGridSpec(
            num_scalar_prefetch=0,
            grid=grid,
            in_specs=[
                pl.BlockSpec((tm, tk), lambda i, j, k: (i, k)),   # loc
                pl.BlockSpec((tm, tk), lambda i, j, k: (i, k)),   # scale
                pl.BlockSpec((tk, tn), lambda i, j, k: (k, j)),   # weight.T (shared)
                pl.BlockSpec((1, tn), lambda i, j, k: (0, j)),    # bias
            ],
            out_specs=pl.BlockSpec((2, tm, tn), lambda i, j, k: (0, i, j)),
            scratch_shapes=[
                pltpu.VMEM((tm, tn), jnp.float32),   # loc accumulator
                pltpu.VMEM((tm, tn), jnp.float32),   # scale accumulator
            ],
        ),
        compiler_params=pltpu.CompilerParams(
            dimension_semantics=("parallel", "parallel", "arbitrary"),
            vmem_limit_bytes=_vmem_limit_bytes(),
        ),
    )(loc_p, scale_p, w_t, b_p)

    return out[0, :B, :N], out[1, :B, :N]


if __name__ == "__main__":
    B = 8
    in_features = 32
    out_features = 64

    key = jax.random.PRNGKey(0)
    k_loc, k_scale, k_w, k_b = jax.random.split(key, 4)

    loc = jax.random.normal(k_loc, (B, in_features), dtype=jnp.float32)
    scale = jnp.abs(jax.random.normal(k_scale, (B, in_features), dtype=jnp.float32))

    # Deterministic nn.Linear-style init: U(-1/sqrt(in), 1/sqrt(in))
    bound = 1.0 / math.sqrt(in_features)
    weight = jax.random.uniform(
        k_w, (out_features, in_features), dtype=jnp.float32, minval=-bound, maxval=bound
    )
    bias = jax.random.uniform(
        k_b, (out_features,), dtype=jnp.float32, minval=-bound, maxval=bound
    )

    loc_out, scale_out = cauchy_linear(loc, scale, weight, bias)
    jax.block_until_ready((loc_out, scale_out))

    # Reference check in plain JAX.
    ref_loc = loc @ weight.T + bias
    ref_scale = scale @ jnp.abs(weight).T
    assert loc_out.shape == ref_loc.shape and scale_out.shape == ref_scale.shape
    assert jnp.allclose(loc_out, ref_loc, atol=1e-5, rtol=1e-5)
    assert jnp.allclose(scale_out, ref_scale, atol=1e-5, rtol=1e-5)

    print("KERNEL_OK")
</pallas_src>

<mosaic_0001>
module attributes {stable_mosaic.version = 11 : i64} {
  func.func @cauchy_linear_kernel(%arg0: i32, %arg1: i32, %arg2: i32, %arg3: memref<8x32xf32, #tpu.memory_space<vmem>>, %arg4: memref<8x32xf32, #tpu.memory_space<vmem>>, %arg5: memref<32x128xf32, #tpu.memory_space<vmem>>, %arg6: memref<1x128xf32, #tpu.memory_space<vmem>>, %arg7: memref<2x8x128xf32, #tpu.memory_space<vmem>>, %arg8: memref<8x128xf32, #tpu.memory_space<vmem>>, %arg9: memref<8x128xf32, #tpu.memory_space<vmem>>) attributes {dimension_semantics = [#tpu.dimension_semantics<parallel>, #tpu.dimension_semantics<parallel>, #tpu.dimension_semantics<arbitrary>], iteration_bounds = array<i64: 1, 1, 1>, scalar_prefetch = 0 : i64, scratch_operands = 2 : i64, tpu.core_type = #tpu.core_type<tc>, window_params = [{transform_indices = @transform_0, window_bounds = array<i64: 8, 32>}, {transform_indices = @transform_1, window_bounds = array<i64: 8, 32>}, {transform_indices = @transform_2, window_bounds = array<i64: 32, 128>}, {transform_indices = @transform_3, window_bounds = array<i64: 1, 128>}, {transform_indices = @transform_4, window_bounds = array<i64: 2, 8, 128>}]} {
    %c0_i32 = arith.constant 0 : i32
    %0 = arith.cmpi eq, %arg2, %c0_i32 : i32
    %1 = arith.extui %0 : i1 to i32
    %c0_i32_0 = arith.constant 0 : i32
    %2 = arith.cmpi ne, %1, %c0_i32_0 : i32
    scf.if %2 {
      %cst_17 = arith.constant 0.000000e+00 : f32
      %18 = vector.broadcast %cst_17 : f32 to vector<8x128xf32>
      %c0_18 = arith.constant 0 : index
      %c0_19 = arith.constant 0 : index
      %19 = vector.load %arg8[%c0_18, %c0_19] : memref<8x128xf32, #tpu.memory_space<vmem>>, vector<8x128xf32>
      tpu.vector_store %arg8[%c0_18, %c0_19], %18 {strides = array<i32>} : memref<8x128xf32, #tpu.memory_space<vmem>>, vector<8x128xf32>,
      %cst_20 = arith.constant 0.000000e+00 : f32
      %20 = vector.broadcast %cst_20 : f32 to vector<8x128xf32>
      %c0_21 = arith.constant 0 : index
      %c0_22 = arith.constant 0 : index
      %21 = vector.load %arg9[%c0_21, %c0_22] : memref<8x128xf32, #tpu.memory_space<vmem>>, vector<8x128xf32>
      tpu.vector_store %arg9[%c0_21, %c0_22], %20 {strides = array<i32>} : memref<8x128xf32, #tpu.memory_space<vmem>>, vector<8x128xf32>,
    } else {
    }
    %c0 = arith.constant 0 : index
    %c0_1 = arith.constant 0 : index
    %3 = vector.load %arg5[%c0, %c0_1] : memref<32x128xf32, #tpu.memory_space<vmem>>, vector<32x128xf32>
    %c0_2 = arith.constant 0 : index
    %c0_3 = arith.constant 0 : index
    %4 = vector.load %arg8[%c0_2, %c0_3] : memref<8x128xf32, #tpu.memory_space<vmem>>, vector<8x128xf32>
    %c0_4 = arith.constant 0 : index
    %c0_5 = arith.constant 0 : index
    %5 = vector.load %arg3[%c0_4, %c0_5] : memref<8x32xf32, #tpu.memory_space<vmem>>, vector<8x32xf32>
    %cst = arith.constant dense<0.000000e+00> : vector<8x128xf32>
    %6 = tpu.matmul %5, %3, %cst {dimension_numbers = #tpu.dot_dimension_numbers<[1], [0], [0], [1], [0, 0, 1, 1], [], []>} : vector<8x32xf32>, vector<32x128xf32>, vector<8x128xf32> -> vector<8x128xf32>
    %7 = arith.addf %4, %6 : vector<8x128xf32>
    %c0_6 = arith.constant 0 : index
    %c0_7 = arith.constant 0 : index
    %8 = vector.load %arg8[%c0_6, %c0_7] : memref<8x128xf32, #tpu.memory_space<vmem>>, vector<8x128xf32>
    tpu.vector_store %arg8[%c0_6, %c0_7], %7 {strides = array<i32>} : memref<8x128xf32, #tpu.memory_space<vmem>>, vector<8x128xf32>,
    %c0_8 = arith.constant 0 : index
    %c0_9 = arith.constant 0 : index
    %9 = vector.load %arg9[%c0_8, %c0_9] : memref<8x128xf32, #tpu.memory_space<vmem>>, vector<8x128xf32>
    %c0_10 = arith.constant 0 : index
    %c0_11 = arith.constant 0 : index
    %10 = vector.load %arg4[%c0_10, %c0_11] : memref<8x32xf32, #tpu.memory_space<vmem>>, vector<8x32xf32>
    %11 = math.absf %3 : vector<32x128xf32>
    %cst_12 = arith.constant dense<0.000000e+00> : vector<8x128xf32>
    %12 = tpu.matmul %10, %11, %cst_12 {dimension_numbers = #tpu.dot_dimension_numbers<[1], [0], [0], [1], [0, 0, 1, 1], [], []>} : vector<8x32xf32>, vector<32x128xf32>, vector<8x128xf32> -> vector<8x128xf32>
    %13 = arith.addf %9, %12 : vector<8x128xf32>
    %c0_13 = arith.constant 0 : index
    %c0_14 = arith.constant 0 : index
    %14 = vector.load %arg9[%c0_13, %c0_14] : memref<8x128xf32, #tpu.memory_space<vmem>>, vector<8x128xf32>
    tpu.vector_store %arg9[%c0_13, %c0_14], %13 {strides = array<i32>} : memref<8x128xf32, #tpu.memory_space<vmem>>, vector<8x128xf32>,
    %c0_i32_15 = arith.constant 0 : i32
    %15 = arith.cmpi eq, %arg2, %c0_i32_15 : i32
    %16 = arith.extui %15 : i1 to i32
    %c0_i32_16 = arith.constant 0 : i32
    %17 = arith.cmpi ne, %16, %c0_i32_16 : i32
    scf.if %17 {
      %c0_17 = arith.constant 0 : index
      %c0_18 = arith.constant 0 : index
      %18 = vector.load %arg8[%c0_17, %c0_18] : memref<8x128xf32, #tpu.memory_space<vmem>>, vector<8x128xf32>
      %c0_19 = arith.constant 0 : index
      %c0_20 = arith.constant 0 : index
      %19 = vector.load %arg6[%c0_19, %c0_20] : memref<1x128xf32, #tpu.memory_space<vmem>>, vector<1x128xf32>
      %20 = vector.broadcast %19 : vector<1x128xf32> to vector<8x128xf32>
      %21 = arith.addf %18, %20 : vector<8x128xf32>
      %c0_21 = arith.constant 0 : index
      %c0_22 = arith.constant 0 : index
      %c0_23 = arith.constant 0 : index
      %22 = vector.load %arg7[%c0_21, %c0_22, %c0_23] : memref<2x8x128xf32, #tpu.memory_space<vmem>>, vector<1x8x128xf32>
      %23 = vector.shape_cast %22 : vector<1x8x128xf32> to vector<8x128xf32>
      %24 = vector.shape_cast %21 : vector<8x128xf32> to vector<1x8x128xf32>
      tpu.vector_store %arg7[%c0_21, %c0_22, %c0_23], %24 {strides = array<i32>} : memref<2x8x128xf32, #tpu.memory_space<vmem>>, vector<1x8x128xf32>,
      %c0_24 = arith.constant 0 : index
      %c0_25 = arith.constant 0 : index
      %25 = vector.load %arg9[%c0_24, %c0_25] : memref<8x128xf32, #tpu.memory_space<vmem>>, vector<8x128xf32>
      %c1 = arith.constant 1 : index
      %c0_26 = arith.constant 0 : index
      %c0_27 = arith.constant 0 : index
      %26 = vector.load %arg7[%c1, %c0_26, %c0_27] : memref<2x8x128xf32, #tpu.memory_space<vmem>>, vector<1x8x128xf32>
      %27 = vector.shape_cast %26 : vector<1x8x128xf32> to vector<8x128xf32>
      %28 = vector.shape_cast %25 : vector<8x128xf32> to vector<1x8x128xf32>
      tpu.vector_store %arg7[%c1, %c0_26, %c0_27], %28 {strides = array<i32>} : memref<2x8x128xf32, #tpu.memory_space<vmem>>, vector<1x8x128xf32>,
    } else {
    }
    return
  }
  func.func @transform_0(%arg0: i32, %arg1: i32, %arg2: i32) -> (i32, i32) {
    %c0_i32 = arith.constant 0 : i32
    return %arg0, %arg2 : i32, i32
  }
  func.func @transform_1(%arg0: i32, %arg1: i32, %arg2: i32) -> (i32, i32) {
    %c0_i32 = arith.constant 0 : i32
    return %arg0, %arg2 : i32, i32
  }
  func.func @transform_2(%arg0: i32, %arg1: i32, %arg2: i32) -> (i32, i32) {
    %c0_i32 = arith.constant 0 : i32
    return %arg2, %arg1 : i32, i32
  }
  func.func @transform_3(%arg0: i32, %arg1: i32, %arg2: i32) -> (i32, i32) {
    %c0_i32 = arith.constant 0 : i32
    %c0_i32_0 = arith.constant 0 : i32
    return %c0_i32, %arg1 : i32, i32
  }
  func.func @transform_4(%arg0: i32, %arg1: i32, %arg2: i32) -> (i32, i32, i32) {
    %c0_i32 = arith.constant 0 : i32
    %c0_i32_0 = arith.constant 0 : i32
    return %c0_i32, %arg0, %arg1 : i32, i32, i32
  }
}

</mosaic_0001>

<bundles_post_ra>
// kernel: tpu_custom_call.1
= control target key start
LH: loop header
LB: loop body
LE: loop exit
PB: predicated region body
PF: predicated region fallthrough
CT: control target
= control target key end

     0   :  { %9 = vsyncpa [#allocation5], 0  ;;  %s499_s0 = inlined_call_operand.hbm [shape: f32[8,32], index: 0, kind: input, shape index: {}]   ;;  %s500_s1 = inlined_call_operand.hbm [shape: f32[8,32], index: 1, kind: input, shape index: {}]   ;;  %s501_s2 = inlined_call_operand.hbm [shape: f32[32,128], index: 2, kind: input, shape index: {}]   ;;  %s502_s3 = inlined_call_operand.vmem [shape: f32[1,128], index: 3, kind: input, shape index: {}]   ;;  %s503_s4 = inlined_call_operand.hbm [shape: f32[2,8,128], index: 4, kind: output, shape index: {}]  }
   0x1   :  { %10 = vsyncpa [#allocation8], 0 }
   0x2   :  { %11 = vsyncpa [#allocation6], 0  ;;  %s408_s15 = smov [#allocation7]   ;;  %s409_s17 = smov [#allocation4]  }
   0x3   :  { %s28_s16 = sshll.u32 %s408_s15, 4  ;;  %s18_s18 = sshll.u32 %s409_s17, 4  ;;  %s29_s16 = int_to_ptr.vmem [resolvable:$true] %s28_s16  ;;  %s19_s18 = int_to_ptr.vmem [resolvable:$true] %s18_s18 }
   0x4   :  { %s314_s21 = scalar_lea.hbm %s500_s1, 128 }
   0x5   :  { %p315_p0 = scmp.ne.s32.totalorder %s500_s1, %s314_s21  ;;  %p318_p1 = scmp.lt.u32.totalorder %s314_s21, %s500_s1 }
   0x7   :  { %p320_p2 = pnand %p318_p1, %p315_p0 }
   0x9   :  { %323 = shalt.err (!%p320_p2)
}
   0xa   :  { %s324_s26 = scalar_lea.vmem %s29_s16, 128  ;;  %p329_p4 = scmp.lt.s32.totalorder %s29_s16, %s29_s16 }
   0xb   :  { %p325_p3 = scmp.ne.s32.totalorder %s29_s16, %s324_s26  ;;  %p330_p5 = scmp.lt.s32.totalorder %s324_s26, %s324_s26 }
   0xd   :  { %p331_p6 = por %p330_p5, %p329_p4 }
   0xf   :  { %p332_p7 = pnand %p331_p6, %p325_p3 }
  0x11   :  { %335 = shalt.err (!%p332_p7)
}
  0x12   :  { %31 = dma.hbm_to_vmem [thread:$0]  %s500_s1, 128, %s29_s16, [#allocation8]  }
  0x13   :  { %s336_s5 = scalar_lea.hbm %s499_s0, 128 }
  0x14   :  { %p337_p8 = scmp.ne.s32.totalorder %s499_s0, %s336_s5  ;;  %p340_p9 = scmp.lt.u32.totalorder %s336_s5, %s499_s0 }
  0x16   :  { %p342_p10 = pnand %p340_p9, %p337_p8 }
  0x18   :  { %345 = shalt.err (!%p342_p10)
}
  0x19   :  { %s346_s10 = scalar_lea.vmem %s19_s18, 128  ;;  %p351_p12 = scmp.lt.s32.totalorder %s19_s18, %s19_s18 }
  0x1a   :  { %p347_p11 = scmp.ne.s32.totalorder %s19_s18, %s346_s10  ;;  %p352_p13 = scmp.lt.s32.totalorder %s346_s10, %s346_s10 }
  0x1c   :  { %p353_p0 = por %p352_p13, %p351_p12 }
  0x1e   :  { %p354_p1 = pnand %p353_p0, %p347_p11 }
  0x20   :  { %357 = shalt.err (!%p354_p1)
}
  0x21   :  { %21 = dma.hbm_to_vmem [thread:$0]  %s499_s0, 128, %s19_s18, [#allocation5]  }
  0x22   :  { %s410_s12 = smov [#allocation9]   ;;  %s358_s16 = scalar_lea.hbm %s501_s2, 512 }
  0x23   :  { %s37_s13 = sshll.u32 %s410_s12, 4  ;;  %p359_p2 = scmp.ne.s32.totalorder %s501_s2, %s358_s16  ;;  %s38_s13 = int_to_ptr.vmem [resolvable:$true] %s37_s13 }
  0x24   :  { %p362_p3 = scmp.lt.u32.totalorder %s358_s16, %s501_s2 }
  0x26   :  { %p364_p4 = pnand %p362_p3, %p359_p2 }
  0x28   :  { %367 = shalt.err (!%p364_p4)
}
  0x29   :  { %s368_s22 = scalar_lea.vmem %s38_s13, 512  ;;  %p373_p6 = scmp.lt.s32.totalorder %s38_s13, %s38_s13 }
  0x2a   :  { %p369_p5 = scmp.ne.s32.totalorder %s38_s13, %s368_s22  ;;  %p374_p7 = scmp.lt.s32.totalorder %s368_s22, %s368_s22 }
  0x2c   :  { %p375_p8 = por %p374_p7, %p373_p6 }
  0x2e   :  { %p376_p9 = pnand %p375_p8, %p369_p5 }
  0x30   :  { %379 = shalt.err (!%p376_p9)
}
  0x31   :  { %s411_s0 = smov 128   ;;  %s412_s18 = smov 8  }
  0x32   :  { %43 = dma.hbm_to_vmem [thread:$0]  %s501_s2, 512, %s38_s13, [#allocation8], %s411_s0, %s411_s0, %s412_s18  }
  0x33   :  { %402 = dma.done.wait [#allocation5], 128  }
  0x34   :  { %403 = vsyncadd [#allocation5], 4294967168 }
  0x35   :  { %404 = dma.done.wait [#allocation8], 640  }
  0x36   :  { %405 = vsyncadd [#allocation8], 4294966656  ;;  %v413_v0 = vmov 0.0|0.0   ;;  %vm414_vm0 = vmmov 0   ;;  %v415_v1 = vmov 0.0   ;;  %v61_v2 = vld [vmem:[#allocation9] sm:$0xff] }
  0x37   :  { %293 = vmatprep.subr.bf16.mxu0 %v413_v0  ;;  %299 = vmatprep.subr.bf16.mxu1 %v413_v0  ;;  %v62_v3 = vld [vmem:[#allocation9 + $0x8] sm:$0xff]  ;;  %v63_v4 = vld [vmem:[#allocation9 + $0x10] sm:$0xff]  ;;  %v145_v6 = vand.u32 2147483647, %v61_v2  ;;  %v64_v8 = vld [vmem:[#allocation9 + $0x18] sm:$0xff]  ;;  %vm67_vm1 = vcmask 261120  }
  0x38   :  { %279 = vmatprep.mubr.msk.f32.mxu0 %vm414_vm0, %v415_v1  ;;  %290 = vmatprep.mubr.msk.f32.mxu1 %vm414_vm0, %v415_v1  ;;  %v294_v5 = vpack.c.bf16 %v62_v3, %v61_v2  ;;  %v146_v7 = vand.u32 2147483647, %v62_v3  ;;  %v147_v9 = vand.u32 2147483647, %v63_v4  ;;  %v148_v10 = vand.u32 2147483647, %v64_v8 }
  0x39   :  { %v297_v12 = vpack.c.bf16 %v64_v8, %v63_v4  ;;  %v66_v14 = vld [vmem:[#allocation4] sm:$0xff]  ;;  %v144_v15 = vld [vmem:[#allocation7] sm:$0xff]  ;;  %s416_s26 = smov [#allocation10]  }
  0x3a   :  { %295 = vmatpush3.bf16.msra.mxu0 %v294_v5  ;;  %v300_v11 = vpack.c.bf16 %v146_v7, %v145_v6  ;;  %v303_v13 = vpack.c.bf16 %v148_v10, %v147_v9  ;;  %v260_v16 = vld [vmem:[%s502_s3] ss:$0 sm:$0xff]  ;;  %s245_s27 = sshll.u32 %s416_s26, 4  ;;  %s246_s27 = int_to_ptr.vmem [resolvable:$true] %s245_s27 }
  0x3b   :  { %296 = vmatprep.subr.bf16.mxu0 %v413_v0  ;;  %s380_s28 = scalar_lea.vmem %s246_s27, 256  ;;  %p385_p11 = scmp.lt.s32.totalorder %s246_s27, %s246_s27 }
  0x3c   :  { %301 = vmatpush3.bf16.msra.mxu1 %v300_v11  ;;  %p381_p10 = scmp.ne.s32.totalorder %s246_s27, %s380_s28  ;;  %p386_p12 = scmp.lt.s32.totalorder %s380_s28, %s380_s28 }
  0x3d   :  { %302 = vmatprep.subr.bf16.mxu1 %v413_v0 }
  0x3e   :  { %298 = vmatpush3.bf16.msra.mxu0 %v297_v12  ;;  %p387_p13 = por %p386_p12, %p385_p11 }
  0x40   :  { %304 = vmatpush3.bf16.msra.mxu1 %v303_v13  ;;  %p388_p0 = pnand %p387_p13, %p381_p10 }
  0x41   :  { %280 = vmatmul.mubr.msk.f32.vlgmr.msra.gmra.mrb[0].mxu0 %vm67_vm1, %v66_v14 }
  0x43   :  { %291 = vmatmul.mubr.msk.f32.vlgmr.msra.gmra.mrb[0].mxu1 %vm67_vm1, %v144_v15 }
 0x114   :  { %v137_v17 = vpop.f32.mrb[0].mxu0 }
 0x115   :  { %v235_v18 = vadd.f32 %v260_v16, %v137_v17  ;;  %v281_v19 = vpop.f32.mrb[1].mxu0 }
 0x116   :  { %v218_v20 = vpop.f32.mrb[0].mxu1 }
 0x117   :  { %236 = vst [vmem:[#allocation10] sm:$0xff] %v235_v18  ;;  %239 = vst [vmem:[#allocation10 + $0x8] sm:$0xff] %v218_v20  ;;  %v292_v21 = vpop.f32.mrb[1].mxu1 }
 0x118   :  { %391 = shalt.err (!%p388_p0)
}
 0x119   :  { %s392_s3 = scalar_lea.hbm %s503_s4, 256 }
 0x11a   :  { %p393_p1 = scmp.ne.s32.totalorder %s503_s4, %s392_s3  ;;  %p396_p2 = scmp.lt.u32.totalorder %s392_s3, %s503_s4 }
 0x11c   :  { %p398_p3 = pnand %p396_p2, %p393_p1 }
 0x11e   :  { %401 = shalt.err (!%p398_p3)
}
 0x11f   :  { %251 = dma.vmem_to_hbm [thread:$0]  %s246_s27, 256, %s503_s4, [#allocation6], %s411_s0, %s411_s0, %s412_s18  }
 0x120   :  { %406 = dma.done.wait [#allocation6], 256  }
 0x121   :  { %407 = vsyncadd [#allocation6], 4294967040 }
 0x122   :  { %255 = vsyncpa [#allocation5], 1 }
 0x123   :  { %256 = vsyncpa [#allocation8], 1 }
 0x124   :  { %257 = vsyncpa [#allocation6], 1 }

</bundles_post_ra>
